<compile_context>
chip_gen: v7x
topology: tpu7x:2x2x1
jax: 0.10.0
libtpu: 0.0.40
codegen_flags: <defaults>
</compile_context>

<pallas_src>
import functools

import numpy as np
import jax
import jax.numpy as jnp
from jax.experimental import pallas as pl
from jax.experimental.pallas import tpu as pltpu

_LANES = 128
_SUBLANES = 8


def _entropy_kernel(x_ref, o_ref, *, d0, s_valid, tile_s, tiles_per_chunk,
                    ragged):
    """One grid step: entropy over d0 classes for tile_s*128 packed positions.

    x_ref : (d0, tile_s, 128)  input block (native dtype; cast to f32 here)
    o_ref : (1, tile_s, 128)   per-chunk f32 accumulator, resident across the
                               inner "arbitrary" grid axis
    """
    t = pl.program_id(1)

    @pl.when(t == 0)
    def _init():
        o_ref[...] = jnp.zeros_like(o_ref)

    # ---- class reduction: ssum = sum exp(x-m), tsum = sum exp(x-m)*(x-m) ----
    # x_ref[k] is re-read from VMEM in each loop instead of keeping d0 live
    # f32 planes, so enlarging tile_s does not spill vregs.
    if d0 == 2:
        # After max subtraction one class is exactly 0 (exp = 1, contributes
        # nothing to tsum): one exp per position instead of two.
        a = x_ref[0].astype(jnp.float32)
        b = x_ref[1].astype(jnp.float32)
        d = -jnp.abs(a - b)                       # shifted value of the min class
        e = jnp.exp(d)
        ssum = 1.0 + e
        tsum = d * e
    else:
        m = x_ref[0].astype(jnp.float32)
        for k in range(1, d0):
            m = jnp.maximum(m, x_ref[k].astype(jnp.float32))
        ssum = jnp.zeros_like(m)
        tsum = jnp.zeros_like(m)
        for k in range(d0):
            shifted = x_ref[k].astype(jnp.float32) - m
            e = jnp.exp(shifted)
            ssum = ssum + e
            tsum = tsum + e * shifted

    # -(softmax * log_softmax).sum(0) == log(s) - t/s   (stable form).
    # Approx reciprocal runs on the EUP; one Newton step restores full f32
    # accuracy and is still cheaper than the VPU divide sequence.
    inv_s = pl.reciprocal(ssum, approx=True)
    inv_s = inv_s * (2.0 - ssum * inv_s)
    ent = jnp.log(ssum) - tsum * inv_s                         # (tile_s, 128)

    # ---- accumulate into the chunk-resident output block --------------------
    if not ragged:
        # Common case: every tile is fully valid -> no masking in the hot loop.
        o_ref[...] += ent[None]
    else:
        c = pl.program_id(0)
        row_start = (c * tiles_per_chunk + t) * tile_s         # scalar, rows

        @pl.when(row_start + tile_s <= s_valid)
        def _full_tile():
            o_ref[...] += ent[None]

        @pl.when(jnp.logical_and(row_start < s_valid,
                                 row_start + tile_s > s_valid))
        def _edge_tile():
            # Only the single row-ragged edge tile pays for the iota/select;
            # rows beyond s_valid hold DMA garbage (possibly NaN/Inf) and are
            # dropped by the select.
            sub = jax.lax.broadcasted_iota(jnp.int32, ent.shape, 0)
            o_ref[...] += jnp.where(row_start + sub < s_valid, ent, 0.0)[None]
        # Tiles with row_start >= s_valid (clamped duplicate blocks, only when
        # num_chunks does not divide the tile count) contribute nothing.


def _num_tensorcores():
    """Best-effort TensorCore count per chip (2 on v7x-class parts, else 1)."""
    try:
        info = pltpu.get_tpu_info()
    except Exception:
        return 1
    for attr in ("num_tensorcores", "tensorcores_per_chip", "num_cores",
                 "cores_per_chip", "core_count"):
        v = getattr(info, attr, None)
        if isinstance(v, int) and v > 0:
            return int(v)
    return 1


def _auto_tile_s(d0, s, itemsize, num_chunks):
    """Rows (128-lane groups) per grid step."""
    in_row = d0 * _LANES * itemsize     # input bytes per packed row (native dtype)
    out_row = _LANES * 4                # accumulator bytes per row (f32)
    # ~4 MiB of input per step sits on the HBM roofline (>=2 MiB blocks measure
    # ~85% of roofline); double-buffered input + output footprint is kept
    # <= ~12 MiB so we stay under the tightest scoped-VMEM default (16 MiB on
    # v5e) on every chip without chip detection.
    want = -(-(4 << 20) // in_row)
    cap = (12 << 20) // (2 * (in_row + out_row))
    tile_s = max(_SUBLANES, min(want, cap))
    # Keep >= ~2 tiles per chunk on larger inputs so the double-buffered DMA
    # always has a next block to prefetch.
    half_chunk = -(-s // (2 * num_chunks))
    half_chunk = -(-half_chunk // _SUBLANES) * _SUBLANES
    tile_s = min(tile_s, max(_SUBLANES, half_chunk))
    # TODO(synk): a sublane-blocked class axis would be needed for huge d0
    # (d0 * 8 * 128 * itemsize approaching VMEM); irrelevant for this module.
    return max(_SUBLANES, (int(tile_s) // _SUBLANES) * _SUBLANES)


def entropy(x: jax.Array, *, tile_s=None, num_chunks=None) -> jax.Array:
    """Pallas TPU implementation of the PyTorch Entropy module."""
    d0 = int(x.shape[0])
    r = int(np.prod(x.shape[1:]))
    x2 = jnp.reshape(x, (d0, r))

    s = -(-r // _LANES)                  # packed 128-lane rows per class
    lane_pad = s * _LANES - r
    if lane_pad:
        # Only the ragged lane tail is padded (< 128 positions per class).
        # Zero-padded columns have entropy exactly log(d0); subtracted
        # analytically below.  When r % 128 == 0 (typical CHW shapes) there is
        # no copy at all and the reshape below is free.
        x2 = jnp.pad(x2, ((0, 0), (0, lane_pad)))
    x3 = x2.reshape(d0, s, _LANES)

    itemsize = int(np.dtype(x.dtype).itemsize)

    if num_chunks is None:
        num_chunks = _num_tensorcores()
    num_chunks = int(max(1, num_chunks))

    if tile_s is None:
        tile_s = _auto_tile_s(d0, s, itemsize, num_chunks)
    tile_s = max(_SUBLANES, (int(tile_s) // _SUBLANES) * _SUBLANES)

    total_tiles = -(-s // tile_s)
    num_chunks = max(1, min(num_chunks, total_tiles))
    tiles_per_chunk = -(-total_tiles // num_chunks)
    num_chunks = -(-total_tiles // tiles_per_chunk)   # every chunk gets valid work
    cover_tiles = num_chunks * tiles_per_chunk

    ragged = cover_tiles * tile_s > s                 # any tile reads past s?
    last_tile = total_tiles - 1
    if cover_tiles > total_tiles:
        # Trailing tiles of the last chunk would start past the array: clamp
        # their block index (in-bounds duplicate DMA) and skip them in-kernel.
        in_index_map = lambda c, t: (
            0, jnp.minimum(c * tiles_per_chunk + t, last_tile), 0)
    else:
        in_index_map = lambda c, t: (0, c * tiles_per_chunk + t, 0)

    kernel = functools.partial(
        _entropy_kernel, d0=d0, s_valid=s, tile_s=tile_s,
        tiles_per_chunk=tiles_per_chunk, ragged=ragged)

    cost = pl.CostEstimate(
        flops=(6 * d0 + 8) * r,
        transcendentals=(2 if d0 == 2 else d0 + 1) * r,
        bytes_accessed=d0 * s * _LANES * itemsize
        + num_chunks * tile_s * _LANES * 4)

    partial_planes = pl.pallas_call(
        kernel,
        out_shape=jax.ShapeDtypeStruct((num_chunks, tile_s, _LANES),
                                       jnp.float32),
        grid_spec=pltpu.PrefetchScalarGridSpec(
            num_scalar_prefetch=0,
            grid=(num_chunks, tiles_per_chunk),
            in_specs=[pl.BlockSpec((d0, tile_s, _LANES), in_index_map)],
            out_specs=pl.BlockSpec((1, tile_s, _LANES), lambda c, t: (c, 0, 0)),
        ),
        compiler_params=pltpu.CompilerParams(
            dimension_semantics=("parallel", "arbitrary")),
        cost_estimate=cost,
    )(x3)

    # Single cross-lane reduce + lane-pad correction + divide-by-R, once,
    # outside the hot loop.
    total = jnp.sum(partial_planes)
    if lane_pad:
        total = total - jnp.float32(lane_pad) * jnp.log(jnp.float32(d0))
    return (total / jnp.float32(r)).astype(jnp.float32)


def _entropy_ref(x: jax.Array) -> jax.Array:
    # pure-JAX reference matching the PyTorch semantics
    xf = x.astype(jnp.float32)
    p = jax.nn.softmax(xf, axis=0)
    logp = jax.nn.log_softmax(xf, axis=0)
    return -(p * logp).sum(0).mean()


if __name__ == "__main__":
    key = jax.random.PRNGKey(0)
    k0, k1, k2, k3 = jax.random.split(key, 4)

    # Primary example: NCHW-like logits, softmax over axis 0 (d0 == 2 fast path).
    x0 = jax.random.normal(k0, (2, 4, 16, 16), dtype=jnp.float32)
    out0 = entropy(x0)
    jax.block_until_ready(out0)
    ref0 = _entropy_ref(x0)
    assert out0.shape == () and out0.dtype == jnp.float32
    assert jnp.allclose(out0, ref0, rtol=1e-4, atol=1e-5), (out0, ref0)

    # Ragged R (not a multiple of 128) + two chunks: exercises the lane-pad
    # correction, the pl.when-gated row-ragged edge tile, and the generic d0 path.
    x1 = jax.random.normal(k1, (3, 5, 17, 19), dtype=jnp.float32)
    out1 = entropy(x1, tile_s=8, num_chunks=2)
    jax.block_until_ready(out1)
    ref1 = _entropy_ref(x1)
    assert jnp.allclose(out1, ref1, rtol=1e-4, atol=1e-5), (out1, ref1)

    # Multi-step accumulation along the inner "arbitrary" axis (grid (2, 3)),
    # fully lane/row-aligned -> mask-free hot loop.
    x2 = jax.random.normal(k2, (4, 6, 32, 32), dtype=jnp.float32) * 3.0
    out2 = entropy(x2, tile_s=8, num_chunks=2)
    jax.block_until_ready(out2)
    ref2 = _entropy_ref(x2)
    assert jnp.allclose(out2, ref2, rtol=1e-4, atol=1e-5), (out2, ref2)

    # Auto tile sizing + TC-count-aware chunk default on a larger (still small)
    # input: multiple tiles per chunk, d0 == 2 fast path.
    x3 = jax.random.normal(k3, (2, 8, 64, 64), dtype=jnp.float32)
    out3 = entropy(x3)
    jax.block_until_ready(out3)
    ref3 = _entropy_ref(x3)
    assert jnp.allclose(out3, ref3, rtol=1e-4, atol=1e-5), (out3, ref3)

    print("KERNEL_OK")
</pallas_src>

<mosaic_0001>
module attributes {stable_mosaic.version = 11 : i64} {
  func.func @_entropy_kernel(%arg0: i32, %arg1: i32, %arg2: memref<2x8x128xf32, #tpu.memory_space<vmem>>, %arg3: memref<1x8x128xf32, #tpu.memory_space<vmem>>) attributes {dimension_semantics = [#tpu.dimension_semantics<parallel>, #tpu.dimension_semantics<arbitrary>], iteration_bounds = array<i64: 1, 1>, scalar_prefetch = 0 : i64, scratch_operands = 0 : i64, tpu.core_type = #tpu.core_type<tc>, window_params = [{transform_indices = @transform_0, window_bounds = array<i64: 2, 8, 128>}, {transform_indices = @transform_1, window_bounds = array<i64: 1, 8, 128>}]} {
    %c0_i32 = arith.constant 0 : i32
    %0 = arith.cmpi eq, %arg1, %c0_i32 : i32
    %1 = arith.extui %0 : i1 to i32
    %c0_i32_0 = arith.constant 0 : i32
    %2 = arith.cmpi ne, %1, %c0_i32_0 : i32
    scf.if %2 {
      %cst_13 = arith.constant 0.000000e+00 : f32
      %27 = vector.broadcast %cst_13 : f32 to vector<1x8x128xf32>
      %c0_14 = arith.constant 0 : index
      %c0_15 = arith.constant 0 : index
      %c0_16 = arith.constant 0 : index
      %28 = vector.load %arg3[%c0_14, %c0_15, %c0_16] : memref<1x8x128xf32, #tpu.memory_space<vmem>>, vector<1x8x128xf32>
      tpu.vector_store %arg3[%c0_14, %c0_15, %c0_16], %27 {strides = array<i32>} : memref<1x8x128xf32, #tpu.memory_space<vmem>>, vector<1x8x128xf32>,
    } else {
    }
    %c0 = arith.constant 0 : index
    %c0_1 = arith.constant 0 : index
    %c0_2 = arith.constant 0 : index
    %3 = vector.load %arg2[%c0, %c0_1, %c0_2] : memref<2x8x128xf32, #tpu.memory_space<vmem>>, vector<1x8x128xf32>
    %4 = vector.shape_cast %3 : vector<1x8x128xf32> to vector<8x128xf32>
    %c1 = arith.constant 1 : index
    %c0_3 = arith.constant 0 : index
    %c0_4 = arith.constant 0 : index
    %5 = vector.load %arg2[%c1, %c0_3, %c0_4] : memref<2x8x128xf32, #tpu.memory_space<vmem>>, vector<1x8x128xf32>
    %6 = vector.shape_cast %5 : vector<1x8x128xf32> to vector<8x128xf32>
    %7 = arith.subf %4, %6 : vector<8x128xf32>
    %8 = math.absf %7 : vector<8x128xf32>
    %cst = arith.constant 0.000000e+00 : f32
    %9 = vector.broadcast %cst : f32 to vector<8x128xf32>
    %10 = arith.subf %9, %8 : vector<8x128xf32>
    %11 = math.exp %10 : vector<8x128xf32>
    %cst_5 = arith.constant 1.000000e+00 : f32
    %12 = vector.broadcast %cst_5 : f32 to vector<8x128xf32>
    %13 = arith.addf %12, %11 : vector<8x128xf32>
    %14 = arith.mulf %10, %11 : vector<8x128xf32>
    %15 = tpu.reciprocal %13 {approx = true} : vector<8x128xf32> -> vector<8x128xf32>
    %16 = arith.mulf %13, %15 : vector<8x128xf32>
    %cst_6 = arith.constant 2.000000e+00 : f32
    %17 = vector.broadcast %cst_6 : f32 to vector<8x128xf32>
    %18 = arith.subf %17, %16 : vector<8x128xf32>
    %19 = arith.mulf %15, %18 : vector<8x128xf32>
    %20 = math.log %13 : vector<8x128xf32>
    %21 = arith.mulf %14, %19 : vector<8x128xf32>
    %22 = arith.subf %20, %21 : vector<8x128xf32>
    %c0_7 = arith.constant 0 : index
    %c0_8 = arith.constant 0 : index
    %c0_9 = arith.constant 0 : index
    %23 = vector.load %arg3[%c0_7, %c0_8, %c0_9] : memref<1x8x128xf32, #tpu.memory_space<vmem>>, vector<1x8x128xf32>
    %24 = vector.shape_cast %22 : vector<8x128xf32> to vector<1x8x128xf32>
    %25 = arith.addf %23, %24 : vector<1x8x128xf32>
    %c0_10 = arith.constant 0 : index
    %c0_11 = arith.constant 0 : index
    %c0_12 = arith.constant 0 : index
    %26 = vector.load %arg3[%c0_10, %c0_11, %c0_12] : memref<1x8x128xf32, #tpu.memory_space<vmem>>, vector<1x8x128xf32>
    tpu.vector_store %arg3[%c0_10, %c0_11, %c0_12], %25 {strides = array<i32>} : memref<1x8x128xf32, #tpu.memory_space<vmem>>, vector<1x8x128xf32>,
    return
  }
  func.func @transform_0(%arg0: i32, %arg1: i32) -> (i32, i32, i32) {
    %c1_i32 = arith.constant 1 : i32
    %0 = arith.muli %arg0, %c1_i32 : i32
    %1 = arith.addi %0, %arg1 : i32
    %c0_i32 = arith.constant 0 : i32
    %c0_i32_0 = arith.constant 0 : i32
    %c0_i32_1 = arith.constant 0 : i32
    return %c0_i32, %1, %c0_i32_0 : i32, i32, i32
  }
  func.func @transform_1(%arg0: i32, %arg1: i32) -> (i32, i32, i32) {
    %c0_i32 = arith.constant 0 : i32
    %c0_i32_0 = arith.constant 0 : i32
    %c0_i32_1 = arith.constant 0 : i32
    return %arg0, %c0_i32, %c0_i32_0 : i32, i32, i32
  }
}

</mosaic_0001>

<bundles_post_ra>
// kernel: tpu_custom_call.1
= control target key start
LH: loop header
LB: loop body
LE: loop exit
PB: predicated region body
PF: predicated region fallthrough
CT: control target
= control target key end

     0   :  { %6 = vsyncpa [#allocation3], 0  ;;  %s165_s0 = inlined_call_operand.hbm [shape: f32[2,8,128], index: 0, kind: input, shape index: {}]   ;;  %s166_s1 = inlined_call_operand.hbm [shape: f32[1,8,128], index: 1, kind: output, shape index: {}]  }
   0x1   :  { %7 = vsyncpa [#allocation4], 0  ;;  %s127_s6 = smov [#allocation2]   ;;  %s79_s10 = scalar_lea.hbm %s165_s0, 256 }
   0x2   :  { %s16_s7 = sshll.u32 %s127_s6, 4  ;;  %p80_p0 = scmp.ne.s32.totalorder %s165_s0, %s79_s10  ;;  %s17_s7 = int_to_ptr.vmem [resolvable:$true] %s16_s7 }
   0x3   :  { %p83_p1 = scmp.lt.u32.totalorder %s79_s10, %s165_s0 }
   0x5   :  { %p85_p2 = pnand %p83_p1, %p80_p0 }
   0x7   :  { %88 = shalt.err (!%p85_p2)
}
   0x8   :  { %s89_s15 = scalar_lea.vmem %s17_s7, 256  ;;  %p94_p4 = scmp.lt.s32.totalorder %s17_s7, %s17_s7 }
   0x9   :  { %p90_p3 = scmp.ne.s32.totalorder %s17_s7, %s89_s15  ;;  %p95_p5 = scmp.lt.s32.totalorder %s89_s15, %s89_s15 }
   0xb   :  { %p96_p6 = por %p95_p5, %p94_p4 }
   0xd   :  { %p97_p7 = pnand %p96_p6, %p90_p3 }
   0xf   :  { %100 = shalt.err (!%p97_p7)
}
  0x10   :  { %s128_s16 = smov 128   ;;  %s129_s17 = smov 8  }
  0x11   :  { %22 = dma.hbm_to_vmem [thread:$0]  %s165_s0, 256, %s17_s7, [#allocation3], %s128_s16, %s128_s16, %s129_s17  }
  0x12   :  { %123 = dma.done.wait [#allocation3], 256  }
  0x13   :  { %124 = vsyncadd [#allocation3], 4294967040  ;;  %v32_v0 = vld [vmem:[#allocation2] sm:$0xff]  ;;  %v34_v1 = vld [vmem:[#allocation2 + $0x8] sm:$0xff]  ;;  %s130_s0 = smov [#allocation5]  }
  0x14   :  { %v35_v2 = vsub.f32 %v32_v0, %v34_v1  ;;  %s59_s20 = sshll.u32 %s130_s0, 4  ;;  %s60_s20 = int_to_ptr.vmem [resolvable:$true] %s59_s20 }
  0x15   :  { %s101_s21 = scalar_lea.vmem %s60_s20, 128  ;;  %p106_p9 = scmp.lt.s32.totalorder %s60_s20, %s60_s20 }
  0x16   :  { %v36_v3 = vand.u32 2147483647, %v35_v2  ;;  %p102_p8 = scmp.ne.s32.totalorder %s60_s20, %s101_s21  ;;  %p107_p10 = scmp.lt.s32.totalorder %s101_s21, %s101_s21 }
  0x18   :  { %v37_v4 = vsub.f32 0.0, %v36_v3  ;;  %p108_p11 = por %p107_p10, %p106_p9 }
  0x1a   :  { %v38_v5 = vmul.f32 1.442695, %v37_v4  ;;  %p109_p12 = pnand %p108_p11, %p102_p8 }
  0x1c   :  { %73 = vpow2.f32 %v38_v5 }
  0x26   :  { %v74_v6 = vpop.eup %73 }
  0x27   :  { %v40_v7 = vadd.f32 1.0, %v74_v6  ;;  %v41_v11 = vmul.f32 %v74_v6, %v37_v4 }
  0x29   :  { %75 = vrcp.f32 %v40_v7 }
  0x2a   :  { %77 = vlog2.f32 %v40_v7 }
  0x33   :  { %v76_v8 = vpop.eup %75 }
  0x34   :  { %v43_v9 = vmul.f32 %v76_v8, %v40_v7  ;;  %v78_v10 = vpop.eup %77 }
  0x35   :  { %v47_v14 = vmul.f32 0.6931472, %v78_v10 }
  0x36   :  { %v44_v12 = vsub.f32 2.0, %v43_v9 }
  0x38   :  { %v45_v13 = vmul.f32 %v76_v8, %v44_v12 }
  0x3a   :  { %v48_v15 = vmul.f32 %v45_v13, %v41_v11 }
  0x3c   :  { %v49_v16 = vsub.f32 %v47_v14, %v48_v15 }
  0x3e   :  { %52 = vst [vmem:[#allocation5] sm:$0xff] %v49_v16 }
  0x3f   :  { %112 = shalt.err (!%p109_p12)
}
  0x40   :  { %s113_s24 = scalar_lea.hbm %s166_s1, 128 }
  0x41   :  { %p114_p13 = scmp.ne.s32.totalorder %s166_s1, %s113_s24  ;;  %p117_p0 = scmp.lt.u32.totalorder %s113_s24, %s166_s1 }
  0x43   :  { %p119_p1 = pnand %p117_p0, %p114_p13 }
  0x45   :  { %122 = shalt.err (!%p119_p1)
}
  0x46   :  { %62 = dma.vmem_to_hbm [thread:$0]  %s60_s20, 128, %s166_s1, [#allocation4]  }
  0x47   :  { %125 = dma.done.wait [#allocation4], 128  }
  0x48   :  { %126 = vsyncadd [#allocation4], 4294967168 }
  0x49   :  { %66 = vsyncpa [#allocation3], 1 }
  0x4a   :  { %67 = vsyncpa [#allocation4], 1 }

</bundles_post_ra>
